<compile_context>
chip_gen: v7x
topology: tpu7x:2x2x1
jax: 0.10.0
libtpu: 0.0.40
codegen_flags: <defaults>
</compile_context>

<pallas_src>
import jax
import jax.numpy as jnp
from jax.experimental import pallas as pl
from jax.experimental.pallas import tpu as pltpu

_LANE = 128


def _linear_kernel(x_ref, wt_ref, b_ref, o_ref):
    # x: (B, In)   wt: (In, Out_pad)   b: (1, Out_pad)   o: (B, Out)
    x = x_ref[...]
    wt = wt_ref[...]
    b = b_ref[...]
    # Canonical (M,K)x(K,N) MXU matmul, f32 accumulation; no in-kernel relayout
    # of the weight (it was pre-transposed once at init).
    y = jnp.dot(x, wt, preferred_element_type=jnp.float32)  # (B, Out_pad)
    y = y + b
    # Write the logical output width directly (Out < 128 -> one masked store,
    # same cost as a padded full-width store, but no post-kernel slice HLO).
    out = o_ref.shape[-1]
    o_ref[...] = y[:, :out].astype(o_ref.dtype)


def prepare_constant_model_params(weight, bias):
    """One-time (init-time) layout prep. weight: (Out, In), bias: (Out,).

    Returns cached, pre-laid-out params:
      wt : (In, Out_pad) f32  -- transposed, zero-padded to a lane multiple
      b2d: (1,  Out_pad) f32  -- bias, zero-padded
    Padding columns are zero so semantics are unchanged. This runs ONCE, not
    in the per-forward hot path.
    """
    out_features, in_features = weight.shape
    out_pad = max(_LANE, ((out_features + _LANE - 1) // _LANE) * _LANE)
    wt = jnp.zeros((in_features, out_pad), dtype=weight.dtype).at[:, :out_features].set(weight.T)
    b2d = jnp.zeros((1, out_pad), dtype=bias.dtype).at[0, :out_features].set(bias)
    wt = jax.block_until_ready(wt)
    b2d = jax.block_until_ready(b2d)
    return {"wt": wt, "b2d": b2d, "out_features": int(out_features)}


def constant_model_forward(params, x):
    """x: (B, In) f32 -> (B, Out) f32. Hot path: exactly one pallas_call."""
    B = x.shape[0]
    out_features = params["out_features"]
    return pl.pallas_call(
        _linear_kernel,
        out_shape=jax.ShapeDtypeStruct((B, out_features), x.dtype),
        in_specs=[
            pl.BlockSpec(memory_space=pltpu.MemorySpace.VMEM),
            pl.BlockSpec(memory_space=pltpu.MemorySpace.VMEM),
            pl.BlockSpec(memory_space=pltpu.MemorySpace.VMEM),
        ],
        out_specs=pl.BlockSpec(memory_space=pltpu.MemorySpace.VMEM),
    )(x, params["wt"], params["b2d"])
    # TODO(synk): for large B/In/Out switch to an (M,N,K)-tiled grid with an
    # f32 VMEM accumulator: fold the bias into the k==0 accumulator init (not a
    # separate epilogue add); bf16 operands with f32 accumulation on v6e/v7x
    # (256-aligned M/N tiles), 128-aligned tiles on v5e; size tiles for v7x's
    # 64 MiB physical / 32 MiB scoped VMEM with explicit vmem_limit_bytes, and
    # mark the M axis "parallel" so v7x's 2 TensorCores split rows.


if __name__ == "__main__":
    # Module config consistent with Linear(inputSize, outputSize):
    batch = 8
    input_size = 32
    output_size = 16
    constant = 3.0

    # Deterministic parameter init exactly as in ConstantModel.__init__:
    #   weight.fill_(0.0), bias.fill_(constant)
    weight = jnp.zeros((output_size, input_size), dtype=jnp.float32)
    bias = jnp.full((output_size,), constant, dtype=jnp.float32)

    # One-time layout prep (model-construction time, NOT per forward call).
    params = prepare_constant_model_params(weight, bias)

    # Deterministic example input.
    key = jax.random.PRNGKey(0)
    x = jax.random.normal(key, (batch, input_size), dtype=jnp.float32)

    y = constant_model_forward(params, x)
    y = jax.block_until_ready(y)

    # Reference check: with zero weight, output == constant everywhere.
    expected = x @ weight.T + bias
    assert y.shape == (batch, output_size)
    assert jnp.allclose(y, expected, atol=1e-6)
    assert jnp.allclose(y, constant, atol=1e-6)

    print("KERNEL_OK")
</pallas_src>

<mosaic_0001>
module attributes {stable_mosaic.version = 11 : i64} {
  func.func @_linear_kernel(%arg0: memref<8x32xf32, #tpu.memory_space<vmem>>, %arg1: memref<32x128xf32, #tpu.memory_space<vmem>>, %arg2: memref<1x128xf32, #tpu.memory_space<vmem>>, %arg3: memref<8x16xf32, #tpu.memory_space<vmem>>) attributes {dimension_semantics = [], scalar_prefetch = 0 : i64, scratch_operands = 0 : i64, tpu.core_type = #tpu.core_type<tc>} {
    %c0 = arith.constant 0 : index
    %c0_0 = arith.constant 0 : index
    %0 = vector.load %arg0[%c0, %c0_0] : memref<8x32xf32, #tpu.memory_space<vmem>>, vector<8x32xf32>
    %c0_1 = arith.constant 0 : index
    %c0_2 = arith.constant 0 : index
    %1 = vector.load %arg1[%c0_1, %c0_2] : memref<32x128xf32, #tpu.memory_space<vmem>>, vector<32x128xf32>
    %c0_3 = arith.constant 0 : index
    %c0_4 = arith.constant 0 : index
    %2 = vector.load %arg2[%c0_3, %c0_4] : memref<1x128xf32, #tpu.memory_space<vmem>>, vector<1x128xf32>
    %cst = arith.constant dense<0.000000e+00> : vector<8x128xf32>
    %3 = tpu.matmul %0, %1, %cst {dimension_numbers = #tpu.dot_dimension_numbers<[1], [0], [0], [1], [0, 0, 1, 1], [], []>} : vector<8x32xf32>, vector<32x128xf32>, vector<8x128xf32> -> vector<8x128xf32>
    %4 = vector.broadcast %2 : vector<1x128xf32> to vector<8x128xf32>
    %5 = arith.addf %3, %4 : vector<8x128xf32>
    %6 = vector.extract_strided_slice %5 {offsets = [0, 0], sizes = [8, 16], strides = [1, 1]} : vector<8x128xf32> to vector<8x16xf32>
    %c0_5 = arith.constant 0 : index
    %c0_6 = arith.constant 0 : index
    %7 = vector.load %arg3[%c0_5, %c0_6] : memref<8x16xf32, #tpu.memory_space<vmem>>, vector<8x16xf32>
    tpu.vector_store %arg3[%c0_5, %c0_6], %6 {strides = array<i32>} : memref<8x16xf32, #tpu.memory_space<vmem>>, vector<8x16xf32>,
    return
  }
}

</mosaic_0001>

<bundles_post_ra>
// kernel: tpu_custom_call.1
= control target key start
LH: loop header
LB: loop body
LE: loop exit
PB: predicated region body
PF: predicated region fallthrough
CT: control target
= control target key end

     0   :  { %8 = vsyncpa [#allocation3], 0  ;;  %s323_s0 = inlined_call_operand.hbm [shape: f32[8,32], index: 0, kind: input, shape index: {}]   ;;  %s324_s1 = inlined_call_operand.hbm [shape: f32[32,128], index: 1, kind: input, shape index: {}]   ;;  %s325_s2 = inlined_call_operand.vmem [shape: f32[1,128], index: 2, kind: input, shape index: {}]   ;;  %s326_s3 = inlined_call_operand.hbm [shape: f32[8,16], index: 3, kind: output, shape index: {}]  }
   0x1   :  { %9 = vsyncpa [#allocation6], 0 }
   0x2   :  { %10 = vsyncpa [#allocation4], 0  ;;  %s249_s12 = smov [#allocation2]   ;;  %s250_s14 = smov [#allocation5]  }
   0x3   :  { %s17_s13 = sshll.u32 %s249_s12, 4  ;;  %s26_s15 = sshll.u32 %s250_s14, 4  ;;  %s18_s13 = int_to_ptr.vmem [resolvable:$true] %s17_s13  ;;  %s277_s15 = int_to_ptr.vmem [resolvable:$true] %s26_s15 }
   0x4   :  { %s177_s18 = scalar_lea.hbm %s323_s0, 128 }
   0x5   :  { %p178_p0 = scmp.ne.s32.totalorder %s323_s0, %s177_s18  ;;  %p181_p1 = scmp.lt.u32.totalorder %s177_s18, %s323_s0 }
   0x7   :  { %p183_p2 = pnand %p181_p1, %p178_p0 }
   0x9   :  { %186 = shalt.err (!%p183_p2)
}
   0xa   :  { %s187_s23 = scalar_lea.vmem %s18_s13, 128  ;;  %p192_p4 = scmp.lt.s32.totalorder %s18_s13, %s18_s13 }
   0xb   :  { %p188_p3 = scmp.ne.s32.totalorder %s18_s13, %s187_s23  ;;  %p193_p5 = scmp.lt.s32.totalorder %s187_s23, %s187_s23 }
   0xd   :  { %p194_p6 = por %p193_p5, %p192_p4 }
   0xf   :  { %p195_p7 = pnand %p194_p6, %p188_p3 }
  0x11   :  { %198 = shalt.err (!%p195_p7)
}
  0x12   :  { %20 = dma.hbm_to_vmem [thread:$0]  %s323_s0, 128, %s18_s13, [#allocation3]  }
  0x13   :  { %s199_s28 = scalar_lea.hbm %s324_s1, 512 }
  0x14   :  { %p200_p8 = scmp.ne.s32.totalorder %s324_s1, %s199_s28  ;;  %p203_p9 = scmp.lt.u32.totalorder %s199_s28, %s324_s1 }
  0x16   :  { %p205_p10 = pnand %p203_p9, %p200_p8 }
  0x18   :  { %208 = shalt.err (!%p205_p10)
}
  0x19   :  { %s209_s6 = scalar_lea.vmem %s277_s15, 512  ;;  %p214_p12 = scmp.lt.s32.totalorder %s277_s15, %s277_s15 }
  0x1a   :  { %p210_p11 = scmp.ne.s32.totalorder %s277_s15, %s209_s6  ;;  %p215_p13 = scmp.lt.s32.totalorder %s209_s6, %s209_s6 }
  0x1c   :  { %p216_p0 = por %p215_p13, %p214_p12 }
  0x1e   :  { %p217_p1 = pnand %p216_p0, %p210_p11 }
  0x20   :  { %220 = shalt.err (!%p217_p1)
}
  0x21   :  { %s251_s0 = smov 128   ;;  %s252_s7 = smov 8  }
  0x22   :  { %32 = dma.hbm_to_vmem [thread:$0]  %s324_s1, 512, %s277_s15, [#allocation6], %s251_s0, %s251_s0, %s252_s7  }
  0x23   :  { %243 = dma.done.wait [#allocation3], 128  }
  0x24   :  { %244 = vsyncadd [#allocation3], 4294967168 }
  0x25   :  { %245 = dma.done.wait [#allocation6], 512  }
  0x26   :  { %246 = vsyncadd [#allocation6], 4294966784  ;;  %v253_v0 = vmov 0.0|0.0   ;;  %vm254_vm0 = vmmov 0   ;;  %v255_v1 = vmov 0.0   ;;  %v42_v2 = vld [vmem:[#allocation5] sm:$0xff] }
  0x27   :  { %163 = vmatprep.subr.bf16.mxu0 %v253_v0  ;;  %160 = vmatprep.mubr.msk.f32.mxu0 %vm254_vm0, %v255_v1  ;;  %v43_v3 = vld [vmem:[#allocation5 + $0x8] sm:$0xff]  ;;  %v44_v4 = vld [vmem:[#allocation5 + $0x10] sm:$0xff]  ;;  %v45_v6 = vld [vmem:[#allocation5 + $0x18] sm:$0xff]  ;;  %vm53_vm1 = vcmask 261120   ;;  %s256_s11 = smov [#allocation7]   ;;  %vm127_vm2 = vcmask 130048  }
  0x28   :  { %v164_v5 = vpack.c.bf16 %v43_v3, %v42_v2  ;;  %v167_v7 = vpack.c.bf16 %v45_v6, %v44_v4  ;;  %v41_v8 = vld [vmem:[#allocation2] sm:$0xff]  ;;  %s135_s12 = sshll.u32 %s256_s11, 4  ;;  %s136_s12 = int_to_ptr.vmem [resolvable:$true] %s135_s12 }
  0x29   :  { %v145_v9 = vld [vmem:[%s325_s2] ss:$0 sm:$0xff]  ;;  %s221_s13 = scalar_lea.vmem %s136_s12, 128  ;;  %p226_p3 = scmp.lt.s32.totalorder %s136_s12, %s136_s12 }
  0x2a   :  { %165 = vmatpush3.bf16.msra.mxu0 %v164_v5  ;;  %p222_p2 = scmp.ne.s32.totalorder %s136_s12, %s221_s13  ;;  %p227_p4 = scmp.lt.s32.totalorder %s221_s13, %s221_s13 }
  0x2b   :  { %166 = vmatprep.subr.bf16.mxu0 %v253_v0 }
  0x2c   :  { %p228_p5 = por %p227_p4, %p226_p3 }
  0x2e   :  { %168 = vmatpush3.bf16.msra.mxu0 %v167_v7  ;;  %p229_p6 = pnand %p228_p5, %p222_p2 }
  0x31   :  { %161 = vmatmul.mubr.msk.f32.vlgmr.msra.gmra.mrb[0].mxu0 %vm53_vm1, %v41_v8 }
 0x104   :  { %v123_v10 = vpop.f32.mrb[0].mxu0 }
 0x105   :  { %v124_v11 = vadd.f32 %v145_v9, %v123_v10  ;;  %v162_v12 = vpop.f32.mrb[1].mxu0 }
 0x107   :  { %128 = vst.msk [vmem:[#allocation7] sm:$0xff] %vm127_vm2, %v124_v11 }
 0x108   :  { %232 = shalt.err (!%p229_p6)
}
 0x109   :  { %s233_s16 = scalar_lea.hbm %s326_s3, 128 }
 0x10a   :  { %p234_p7 = scmp.ne.s32.totalorder %s326_s3, %s233_s16  ;;  %p237_p8 = scmp.lt.u32.totalorder %s233_s16, %s326_s3 }
 0x10c   :  { %p239_p9 = pnand %p237_p8, %p234_p7 }
 0x10e   :  { %242 = shalt.err (!%p239_p9)
}
 0x10f   :  { %138 = dma.vmem_to_hbm [thread:$0]  %s136_s12, 128, %s326_s3, [#allocation4]  }
 0x110   :  { %247 = dma.done.wait [#allocation4], 128  }
 0x111   :  { %248 = vsyncadd [#allocation4], 4294967168 }
 0x112   :  { %142 = vsyncpa [#allocation3], 1 }
 0x113   :  { %143 = vsyncpa [#allocation6], 1 }
 0x114   :  { %144 = vsyncpa [#allocation4], 1 }

</bundles_post_ra>
